<compile_context>
chip_gen: v7x
topology: tpu7x:2x2x1
jax: 0.10.0
libtpu: 0.0.40
codegen_flags: <defaults>
</compile_context>

<pallas_src>
import jax
import jax.numpy as jnp
from jax.experimental import pallas as pl
from jax.experimental.pallas import tpu as pltpu

_LANE = 128
_NEG_BIG = -1e30  # "minus infinity" for padded logit lanes (avoids inf/NaN paths)


def _round_up(x, m):
    return (x + m - 1) // m * m


def _discriminator_kernel(x_ref, w1_ref, b1_ref, w2_ref, b2_ref, w3_ref, b3_ref,
                          o_ref):
    """Fused 3-layer MLP + log-softmax on one lane-dense batch tile."""
    x = x_ref[...]

    # Layer 1: Linear + ReLU (MXU matmul, f32 accumulation)
    h1 = jnp.dot(x, w1_ref[...], preferred_element_type=jnp.float32)
    h1 = jnp.maximum(h1 + b1_ref[...], 0.0)

    # Layer 2: Linear + ReLU
    h2 = jnp.dot(h1, w2_ref[...], preferred_element_type=jnp.float32)
    h2 = jnp.maximum(h2 + b2_ref[...], 0.0)

    # Layer 3: Linear.  Padded output lanes already carry a huge negative bias,
    # so they contribute nothing to the softmax normalization below.
    logits = jnp.dot(h2, w3_ref[...], preferred_element_type=jnp.float32)
    logits = logits + b3_ref[...]

    # Numerically-stable LogSoftmax over the (padded, lane-aligned) feature axis.
    m = jnp.max(logits, axis=-1, keepdims=True)
    z = logits - m
    lse = jnp.log(jnp.sum(jnp.exp(z), axis=-1, keepdims=True))
    o_ref[...] = (z - lse).astype(o_ref.dtype)


def discriminator_forward(x, params, *, tile_b_max=512):
    """Wrapper: pads to lane-dense shapes, tiles the batch, slices result back."""
    w1, b1, w2, b2, w3, b3 = params
    batch, input_dims = x.shape
    hidden_dims = w1.shape[1]
    output_dims = w3.shape[1]

    in_p = _round_up(input_dims, _LANE)
    h_p = _round_up(hidden_dims, _LANE)
    o_p = _round_up(output_dims, _LANE)

    # Batch tile: multiple of 8 sublanes, capped so double-buffered x/o tiles
    # plus resident weights stay far below even the v7x 64 MiB VMEM.
    tile_b = min(tile_b_max, _round_up(batch, 8))
    batch_p = _round_up(batch, tile_b)
    grid = (batch_p // tile_b,)

    f32 = jnp.float32
    # Zero-pad activations / weights to lane-dense shapes (pure wrapper plumbing).
    xp = jnp.zeros((batch_p, in_p), f32).at[:batch, :input_dims].set(x)
    w1p = jnp.zeros((in_p, h_p), f32).at[:input_dims, :hidden_dims].set(w1)
    b1p = jnp.zeros((1, h_p), f32).at[:, :hidden_dims].set(b1)
    w2p = jnp.zeros((h_p, h_p), f32).at[:hidden_dims, :hidden_dims].set(w2)
    b2p = jnp.zeros((1, h_p), f32).at[:, :hidden_dims].set(b2)
    w3p = jnp.zeros((h_p, o_p), f32).at[:hidden_dims, :output_dims].set(w3)
    # Padded output lanes get a very negative bias so they vanish in log-softmax.
    b3p = jnp.full((1, o_p), _NEG_BIG, f32).at[:, :output_dims].set(b3)

    def resident(shape):
        # Weights/biases: same block every grid step -> stay resident in VMEM.
        return pl.BlockSpec(shape, lambda i: (0, 0))

    out_padded = pl.pallas_call(
        _discriminator_kernel,
        out_shape=jax.ShapeDtypeStruct((batch_p, o_p), f32),
        grid=grid,
        in_specs=[
            pl.BlockSpec((tile_b, in_p), lambda i: (i, 0)),  # x: batch-tiled
            resident((in_p, h_p)),
            resident((1, h_p)),
            resident((h_p, h_p)),
            resident((1, h_p)),
            resident((h_p, o_p)),
            resident((1, o_p)),
        ],
        out_specs=pl.BlockSpec((tile_b, o_p), lambda i: (i, 0)),
        compiler_params=pltpu.CompilerParams(
            dimension_semantics=("parallel",),   # let v7x shard batch tiles on 2 TCs
            vmem_limit_bytes=32 * 1024 * 1024,
        ),
    )(xp, w1p, b1p, w2p, b2p, w3p, b3p)

    # Slice away batch padding and padded output lanes.
    return out_padded[:batch, :output_dims]


def init_params(key, input_dims, hidden_dims, output_dims):
    """Deterministic synthetic parameters (nn.Linear-style init, stored as (in, out))."""
    k1, k2, k3, k4, k5, k6 = jax.random.split(key, 6)
    s1 = 1.0 / jnp.sqrt(input_dims)
    s2 = 1.0 / jnp.sqrt(hidden_dims)
    w1 = jax.random.uniform(k1, (input_dims, hidden_dims), jnp.float32, -s1, s1)
    b1 = jax.random.uniform(k2, (1, hidden_dims), jnp.float32, -s1, s1)
    w2 = jax.random.uniform(k3, (hidden_dims, hidden_dims), jnp.float32, -s2, s2)
    b2 = jax.random.uniform(k4, (1, hidden_dims), jnp.float32, -s2, s2)
    w3 = jax.random.uniform(k5, (hidden_dims, output_dims), jnp.float32, -s2, s2)
    b3 = jax.random.uniform(k6, (1, output_dims), jnp.float32, -s2, s2)
    return (w1, b1, w2, b2, w3, b3)


def reference_forward(x, params):
    """Pure-JAX reference for correctness checking."""
    w1, b1, w2, b2, w3, b3 = params
    h1 = jnp.maximum(x @ w1 + b1, 0.0)
    h2 = jnp.maximum(h1 @ w2 + b2, 0.0)
    logits = h2 @ w3 + b3
    return jax.nn.log_softmax(logits, axis=-1)


if __name__ == "__main__":
    batch = 8
    input_dims = 64
    hidden_dims = 32
    output_dims = 4

    key = jax.random.PRNGKey(0)
    kx, kp = jax.random.split(key)
    x = jax.random.normal(kx, (batch, input_dims), jnp.float32)
    params = init_params(kp, input_dims, hidden_dims, output_dims)

    out = discriminator_forward(x, params)
    out = jax.block_until_ready(out)

    ref = reference_forward(x, params)
    assert out.shape == (batch, output_dims)
    assert jnp.allclose(out, ref, atol=1e-4, rtol=1e-4), (
        f"max abs err = {jnp.max(jnp.abs(out - ref))}")

    print("KERNEL_OK")
</pallas_src>

<mosaic_0001>
module attributes {stable_mosaic.version = 11 : i64} {
  func.func @_discriminator_kernel(%arg0: i32, %arg1: memref<8x128xf32, #tpu.memory_space<vmem>>, %arg2: memref<128x128xf32, #tpu.memory_space<vmem>>, %arg3: memref<1x128xf32, #tpu.memory_space<vmem>>, %arg4: memref<128x128xf32, #tpu.memory_space<vmem>>, %arg5: memref<1x128xf32, #tpu.memory_space<vmem>>, %arg6: memref<128x128xf32, #tpu.memory_space<vmem>>, %arg7: memref<1x128xf32, #tpu.memory_space<vmem>>, %arg8: memref<8x128xf32, #tpu.memory_space<vmem>>) attributes {dimension_semantics = [#tpu.dimension_semantics<parallel>], iteration_bounds = array<i64: 1>, scalar_prefetch = 0 : i64, scratch_operands = 0 : i64, tpu.core_type = #tpu.core_type<tc>, window_params = [{transform_indices = @transform_0, window_bounds = array<i64: 8, 128>}, {pipeline_mode = #tpu.pipeline_mode<synchronous>, transform_indices = @transform_1, window_bounds = array<i64: 128, 128>}, {pipeline_mode = #tpu.pipeline_mode<synchronous>, transform_indices = @transform_2, window_bounds = array<i64: 1, 128>}, {pipeline_mode = #tpu.pipeline_mode<synchronous>, transform_indices = @transform_3, window_bounds = array<i64: 128, 128>}, {pipeline_mode = #tpu.pipeline_mode<synchronous>, transform_indices = @transform_4, window_bounds = array<i64: 1, 128>}, {pipeline_mode = #tpu.pipeline_mode<synchronous>, transform_indices = @transform_5, window_bounds = array<i64: 128, 128>}, {pipeline_mode = #tpu.pipeline_mode<synchronous>, transform_indices = @transform_6, window_bounds = array<i64: 1, 128>}, {transform_indices = @transform_7, window_bounds = array<i64: 8, 128>}]} {
    %c0 = arith.constant 0 : index
    %c0_0 = arith.constant 0 : index
    %0 = vector.load %arg1[%c0, %c0_0] : memref<8x128xf32, #tpu.memory_space<vmem>>, vector<8x128xf32>
    %c0_1 = arith.constant 0 : index
    %c0_2 = arith.constant 0 : index
    %1 = vector.load %arg2[%c0_1, %c0_2] : memref<128x128xf32, #tpu.memory_space<vmem>>, vector<128x128xf32>
    %cst = arith.constant dense<0.000000e+00> : vector<8x128xf32>
    %2 = tpu.matmul %0, %1, %cst {dimension_numbers = #tpu.dot_dimension_numbers<[1], [0], [0], [1], [0, 0, 1, 1], [], []>} : vector<8x128xf32>, vector<128x128xf32>, vector<8x128xf32> -> vector<8x128xf32>
    %c0_3 = arith.constant 0 : index
    %c0_4 = arith.constant 0 : index
    %3 = vector.load %arg3[%c0_3, %c0_4] : memref<1x128xf32, #tpu.memory_space<vmem>>, vector<1x128xf32>
    %4 = vector.broadcast %3 : vector<1x128xf32> to vector<8x128xf32>
    %5 = arith.addf %2, %4 : vector<8x128xf32>
    %cst_5 = arith.constant 0.000000e+00 : f32
    %6 = vector.broadcast %cst_5 : f32 to vector<8x128xf32>
    %7 = arith.maximumf %5, %6 : vector<8x128xf32>
    %c0_6 = arith.constant 0 : index
    %c0_7 = arith.constant 0 : index
    %8 = vector.load %arg4[%c0_6, %c0_7] : memref<128x128xf32, #tpu.memory_space<vmem>>, vector<128x128xf32>
    %cst_8 = arith.constant dense<0.000000e+00> : vector<8x128xf32>
    %9 = tpu.matmul %7, %8, %cst_8 {dimension_numbers = #tpu.dot_dimension_numbers<[1], [0], [0], [1], [0, 0, 1, 1], [], []>} : vector<8x128xf32>, vector<128x128xf32>, vector<8x128xf32> -> vector<8x128xf32>
    %c0_9 = arith.constant 0 : index
    %c0_10 = arith.constant 0 : index
    %10 = vector.load %arg5[%c0_9, %c0_10] : memref<1x128xf32, #tpu.memory_space<vmem>>, vector<1x128xf32>
    %11 = vector.broadcast %10 : vector<1x128xf32> to vector<8x128xf32>
    %12 = arith.addf %9, %11 : vector<8x128xf32>
    %cst_11 = arith.constant 0.000000e+00 : f32
    %13 = vector.broadcast %cst_11 : f32 to vector<8x128xf32>
    %14 = arith.maximumf %12, %13 : vector<8x128xf32>
    %c0_12 = arith.constant 0 : index
    %c0_13 = arith.constant 0 : index
    %15 = vector.load %arg6[%c0_12, %c0_13] : memref<128x128xf32, #tpu.memory_space<vmem>>, vector<128x128xf32>
    %cst_14 = arith.constant dense<0.000000e+00> : vector<8x128xf32>
    %16 = tpu.matmul %14, %15, %cst_14 {dimension_numbers = #tpu.dot_dimension_numbers<[1], [0], [0], [1], [0, 0, 1, 1], [], []>} : vector<8x128xf32>, vector<128x128xf32>, vector<8x128xf32> -> vector<8x128xf32>
    %c0_15 = arith.constant 0 : index
    %c0_16 = arith.constant 0 : index
    %17 = vector.load %arg7[%c0_15, %c0_16] : memref<1x128xf32, #tpu.memory_space<vmem>>, vector<1x128xf32>
    %18 = vector.broadcast %17 : vector<1x128xf32> to vector<8x128xf32>
    %19 = arith.addf %16, %18 : vector<8x128xf32>
    %cst_17 = arith.constant dense<0xFF800000> : vector<8xf32>
    %20 = vector.multi_reduction <maximumf>, %19, %cst_17 [1] : vector<8x128xf32> to vector<8xf32>
    %21 = vector.shape_cast %20 : vector<8xf32> to vector<8x1xf32>
    %22 = vector.broadcast %21 : vector<8x1xf32> to vector<8x128xf32>
    %23 = arith.subf %19, %22 : vector<8x128xf32>
    %24 = math.exp %23 : vector<8x128xf32>
    %cst_18 = arith.constant dense<0.000000e+00> : vector<8xf32>
    %25 = vector.multi_reduction <add>, %24, %cst_18 [1] : vector<8x128xf32> to vector<8xf32>
    %26 = vector.shape_cast %25 : vector<8xf32> to vector<8x1xf32>
    %27 = math.log %26 : vector<8x1xf32>
    %28 = vector.broadcast %27 : vector<8x1xf32> to vector<8x128xf32>
    %29 = arith.subf %23, %28 : vector<8x128xf32>
    %c0_19 = arith.constant 0 : index
    %c0_20 = arith.constant 0 : index
    %30 = vector.load %arg8[%c0_19, %c0_20] : memref<8x128xf32, #tpu.memory_space<vmem>>, vector<8x128xf32>
    tpu.vector_store %arg8[%c0_19, %c0_20], %29 {strides = array<i32>} : memref<8x128xf32, #tpu.memory_space<vmem>>, vector<8x128xf32>,
    return
  }
  func.func @transform_0(%arg0: i32) -> (i32, i32) {
    %c0_i32 = arith.constant 0 : i32
    %c0_i32_0 = arith.constant 0 : i32
    return %arg0, %c0_i32 : i32, i32
  }
  func.func @transform_1(%arg0: i32) -> (i32, i32) {
    %c0_i32 = arith.constant 0 : i32
    %c0_i32_0 = arith.constant 0 : i32
    %c0_i32_1 = arith.constant 0 : i32
    return %c0_i32, %c0_i32_0 : i32, i32
  }
  func.func @transform_2(%arg0: i32) -> (i32, i32) {
    %c0_i32 = arith.constant 0 : i32
    %c0_i32_0 = arith.constant 0 : i32
    %c0_i32_1 = arith.constant 0 : i32
    return %c0_i32, %c0_i32_0 : i32, i32
  }
  func.func @transform_3(%arg0: i32) -> (i32, i32) {
    %c0_i32 = arith.constant 0 : i32
    %c0_i32_0 = arith.constant 0 : i32
    %c0_i32_1 = arith.constant 0 : i32
    return %c0_i32, %c0_i32_0 : i32, i32
  }
  func.func @transform_4(%arg0: i32) -> (i32, i32) {
    %c0_i32 = arith.constant 0 : i32
    %c0_i32_0 = arith.constant 0 : i32
    %c0_i32_1 = arith.constant 0 : i32
    return %c0_i32, %c0_i32_0 : i32, i32
  }
  func.func @transform_5(%arg0: i32) -> (i32, i32) {
    %c0_i32 = arith.constant 0 : i32
    %c0_i32_0 = arith.constant 0 : i32
    %c0_i32_1 = arith.constant 0 : i32
    return %c0_i32, %c0_i32_0 : i32, i32
  }
  func.func @transform_6(%arg0: i32) -> (i32, i32) {
    %c0_i32 = arith.constant 0 : i32
    %c0_i32_0 = arith.constant 0 : i32
    %c0_i32_1 = arith.constant 0 : i32
    return %c0_i32, %c0_i32_0 : i32, i32
  }
  func.func @transform_7(%arg0: i32) -> (i32, i32) {
    %c0_i32 = arith.constant 0 : i32
    %c0_i32_0 = arith.constant 0 : i32
    return %arg0, %c0_i32 : i32, i32
  }
}

</mosaic_0001>

<bundles_post_ra>
// kernel: tpu_custom_call.1
= control target key start
LH: loop header
LB: loop body
LE: loop exit
PB: predicated region body
PF: predicated region fallthrough
CT: control target
= control target key end

     0   :  { %12 = vsyncpa [#allocation3], 0  ;;  %s911_s0 = inlined_call_operand.hbm [shape: f32[8,128], index: 0, kind: input, shape index: {}]   ;;  %s912_s1 = inlined_call_operand.hbm [shape: f32[128,128], index: 1, kind: input, shape index: {}]   ;;  %s913_s2 = inlined_call_operand.vmem [shape: f32[1,128], index: 2, kind: input, shape index: {}]   ;;  %s914_s3 = inlined_call_operand.hbm [shape: f32[128,128], index: 3, kind: input, shape index: {}]   ;;  %s915_s4 = inlined_call_operand.vmem [shape: f32[1,128], index: 4, kind: input, shape index: {}]   ;;  %s916_s5 = inlined_call_operand.hbm [shape: f32[128,128], index: 5, kind: input, shape index: {}]   ;;  %s917_s6 = inlined_call_operand.vmem [shape: f32[1,128], index: 6, kind: input, shape index: {}]   ;;  %s918_s7 = inlined_call_operand.hbm [shape: f32[8,128], index: 7, kind: output, shape index: {}]  }
   0x1   :  { %13 = vsyncpa [#allocation6], 0 }
   0x2   :  { %14 = vsyncpa [#allocation9], 0 }
   0x3   :  { %15 = vsyncpa [#allocation4], 0  ;;  %s753_s24 = smov [#allocation5]   ;;  %s635_s28 = scalar_lea.hbm %s912_s1, 2048 }
   0x4   :  { %s31_s25 = sshll.u32 %s753_s24, 4  ;;  %p636_p0 = scmp.ne.s32.totalorder %s912_s1, %s635_s28  ;;  %s32_s25 = int_to_ptr.vmem [resolvable:$true] %s31_s25 }
   0x5   :  { %p639_p1 = scmp.lt.u32.totalorder %s635_s28, %s912_s1 }
   0x7   :  { %p641_p2 = pnand %p639_p1, %p636_p0 }
   0x9   :  { %644 = shalt.err (!%p641_p2)
}
   0xa   :  { %s645_s10 = scalar_lea.vmem %s32_s25, 2048  ;;  %p650_p4 = scmp.lt.s32.totalorder %s32_s25, %s32_s25 }
   0xb   :  { %p646_p3 = scmp.ne.s32.totalorder %s32_s25, %s645_s10  ;;  %p651_p5 = scmp.lt.s32.totalorder %s645_s10, %s645_s10 }
   0xd   :  { %p652_p6 = por %p651_p5, %p650_p4 }
   0xf   :  { %p653_p7 = pnand %p652_p6, %p646_p3 }
  0x11   :  { %656 = shalt.err (!%p653_p7)
}
  0x12   :  { %s754_s11 = smov 128   ;;  %s755_s12 = smov 8  }
  0x13   :  { %37 = dma.hbm_to_vmem [thread:$0]  %s912_s1, 2048, %s32_s25, [#allocation6], %s754_s11, %s754_s11, %s755_s12  }
  0x14   :  { %s756_s15 = smov [#allocation2]   ;;  %s757_s17 = smov [#allocation7]  }
  0x15   :  { %s22_s16 = sshll.u32 %s756_s15, 4  ;;  %s45_s18 = sshll.u32 %s757_s17, 4  ;;  %s23_s16 = int_to_ptr.vmem [resolvable:$true] %s22_s16  ;;  %s46_s18 = int_to_ptr.vmem [resolvable:$true] %s45_s18 }
  0x16   :  { %s657_s21 = scalar_lea.hbm %s911_s0, 128 }
  0x17   :  { %p658_p8 = scmp.ne.s32.totalorder %s911_s0, %s657_s21  ;;  %p661_p9 = scmp.lt.u32.totalorder %s657_s21, %s911_s0 }
  0x19   :  { %p663_p10 = pnand %p661_p9, %p658_p8 }
  0x1b   :  { %666 = shalt.err (!%p663_p10)
}
  0x1c   :  { %s667_s1 = scalar_lea.vmem %s23_s16, 128  ;;  %p672_p12 = scmp.lt.s32.totalorder %s23_s16, %s23_s16 }
  0x1d   :  { %p668_p11 = scmp.ne.s32.totalorder %s23_s16, %s667_s1  ;;  %p673_p13 = scmp.lt.s32.totalorder %s667_s1, %s667_s1 }
  0x1f   :  { %p674_p0 = por %p673_p13, %p672_p12 }
  0x21   :  { %p675_p1 = pnand %p674_p0, %p668_p11 }
  0x23   :  { %678 = shalt.err (!%p675_p1)
}
  0x24   :  { %25 = dma.hbm_to_vmem [thread:$0]  %s911_s0, 128, %s23_s16, [#allocation3]  }
  0x25   :  { %s679_s30 = scalar_lea.hbm %s914_s3, 2048 }
  0x26   :  { %p680_p2 = scmp.ne.s32.totalorder %s914_s3, %s679_s30  ;;  %p683_p3 = scmp.lt.u32.totalorder %s679_s30, %s914_s3 }
  0x28   :  { %p685_p4 = pnand %p683_p3, %p680_p2 }
  0x2a   :  { %688 = shalt.err (!%p685_p4)
}
  0x2b   :  { %s689_s14 = scalar_lea.vmem %s46_s18, 2048  ;;  %p694_p6 = scmp.lt.s32.totalorder %s46_s18, %s46_s18 }
  0x2c   :  { %p690_p5 = scmp.ne.s32.totalorder %s46_s18, %s689_s14  ;;  %p695_p7 = scmp.lt.s32.totalorder %s689_s14, %s689_s14 }
  0x2e   :  { %p696_p8 = por %p695_p7, %p694_p6 }
  0x30   :  { %p697_p9 = pnand %p696_p8, %p690_p5 }
  0x32   :  { %700 = shalt.err (!%p697_p9)
}
  0x33   :  { %51 = dma.hbm_to_vmem [thread:$0]  %s914_s3, 2048, %s46_s18, [#allocation6], %s754_s11, %s754_s11, %s755_s12  }
  0x34   :  { %s758_s16 = smov [#allocation8]   ;;  %s701_s21 = scalar_lea.hbm %s916_s5, 2048 }
  0x35   :  { %s59_s17 = sshll.u32 %s758_s16, 4  ;;  %p702_p10 = scmp.ne.s32.totalorder %s916_s5, %s701_s21  ;;  %s60_s17 = int_to_ptr.vmem [resolvable:$true] %s59_s17 }
  0x36   :  { %p705_p11 = scmp.lt.u32.totalorder %s701_s21, %s916_s5 }
  0x38   :  { %p707_p12 = pnand %p705_p11, %p702_p10 }
  0x3a   :  { %710 = shalt.err (!%p707_p12)
}
  0x3b   :  { %s711_s1 = scalar_lea.vmem %s60_s17, 2048  ;;  %p716_p0 = scmp.lt.s32.totalorder %s60_s17, %s60_s17 }
  0x3c   :  { %p712_p13 = scmp.ne.s32.totalorder %s60_s17, %s711_s1  ;;  %p717_p1 = scmp.lt.s32.totalorder %s711_s1, %s711_s1 }
  0x3e   :  { %p718_p2 = por %p717_p1, %p716_p0 }
  0x40   :  { %p719_p3 = pnand %p718_p2, %p712_p13 }
  0x42   :  { %722 = shalt.err (!%p719_p3)
}
  0x43   :  { %65 = dma.hbm_to_vmem [thread:$0]  %s916_s5, 2048, %s60_s17, [#allocation9], %s754_s11, %s754_s11, %s755_s12  }
  0x44   :  { %745 = dma.done.wait [#allocation3], 128  }
  0x45   :  { %746 = vsyncadd [#allocation3], 4294967168 }
  0x46   :  { %747 = dma.done.wait [#allocation6], 4096  }
  0x47   :  { %748 = vsyncadd [#allocation6], 4294963200 }
  0x48   :  { %749 = dma.done.wait [#allocation9], 2048  }
  0x49   :  { %750 = vsyncadd [#allocation9], 4294965248  ;;  %v759_v0 = vmov 0.0|0.0   ;;  %vm760_vm0 = vmmov 0   ;;  %v761_v1 = vmov 0.0   ;;  %v81_v2 = vld [vmem:[#allocation5] sm:$0xff] }
  0x4a   :  { %549 = vmatprep.subr.bf16.mxu0 %v759_v0  ;;  %476 = vmatprep.mubr.msk.f32.mxu0 %vm760_vm0, %v761_v1  ;;  %v82_v3 = vld [vmem:[#allocation5 + $0x8] sm:$0xff]  ;;  %v83_v4 = vld [vmem:[#allocation5 + $0x10] sm:$0xff]  ;;  %v84_v6 = vld [vmem:[#allocation5 + $0x18] sm:$0xff] }
  0x4b   :  { %573 = vmatprep.subr.bf16.mxu1 %v759_v0  ;;  %511 = vmatprep.mubr.msk.f32.mxu1 %vm760_vm0, %v761_v1  ;;  %v550_v5 = vpack.c.bf16 %v82_v3, %v81_v2  ;;  %v553_v7 = vpack.c.bf16 %v84_v6, %v83_v4  ;;  %v85_v8 = vld [vmem:[#allocation5 + $0x20] sm:$0xff]  ;;  %v86_v9 = vld [vmem:[#allocation5 + $0x28] sm:$0xff]  ;;  %v177_v12 = vld [vmem:[#allocation7 + $0x10] sm:$0xff] }
  0x4c   :  { %v175_v10 = vld [vmem:[#allocation7] sm:$0xff]  ;;  %v176_v11 = vld [vmem:[#allocation7 + $0x8] sm:$0xff]  ;;  %v178_v13 = vld [vmem:[#allocation7 + $0x18] sm:$0xff]  ;;  %v556_v14 = vpack.c.bf16 %v86_v9, %v85_v8 }
  0x4d   :  { %551 = vmatpush3.bf16.msra.mxu0 %v550_v5  ;;  %v574_v15 = vpack.c.bf16 %v176_v11, %v175_v10  ;;  %v87_v16 = vld [vmem:[#allocation5 + $0x30] sm:$0xff]  ;;  %v88_v17 = vld [vmem:[#allocation5 + $0x38] sm:$0xff]  ;;  %v577_v18 = vpack.c.bf16 %v178_v13, %v177_v12  ;;  %v179_v19 = vld [vmem:[#allocation7 + $0x20] sm:$0xff] }
  0x4e   :  { %552 = vmatprep.subr.bf16.mxu0 %v759_v0  ;;  %v180_v20 = vld [vmem:[#allocation7 + $0x28] sm:$0xff]  ;;  %v559_v21 = vpack.c.bf16 %v88_v17, %v87_v16  ;;  %v89_v22 = vld [vmem:[#allocation5 + $0x40] sm:$0xff]  ;;  %v181_v25 = vld [vmem:[#allocation7 + $0x30] sm:$0xff] }
  0x4f   :  { %575 = vmatpush3.bf16.msra.mxu1 %v574_v15  ;;  %v90_v23 = vld [vmem:[#allocation5 + $0x48] sm:$0xff]  ;;  %v580_v24 = vpack.c.bf16 %v180_v20, %v179_v19  ;;  %v182_v26 = vld [vmem:[#allocation7 + $0x38] sm:$0xff]  ;;  %v91_v28 = vld [vmem:[#allocation5 + $0x50] sm:$0xff] }
  0x50   :  { %576 = vmatprep.subr.bf16.mxu1 %v759_v0  ;;  %v562_v27 = vpack.c.bf16 %v90_v23, %v89_v22  ;;  %v92_v29 = vld [vmem:[#allocation5 + $0x58] sm:$0xff]  ;;  %v583_v30 = vpack.c.bf16 %v182_v26, %v181_v25  ;;  %v183_v31 = vld [vmem:[#allocation7 + $0x40] sm:$0xff]  ;;  %v184_v32 = vld [vmem:[#allocation7 + $0x48] sm:$0xff] }
  0x51   :  { %554 = vmatpush3.bf16.msra.mxu0 %v553_v7  ;;  %v565_v33 = vpack.c.bf16 %v92_v29, %v91_v28  ;;  %v93_v34 = vld [vmem:[#allocation5 + $0x60] sm:$0xff]  ;;  %v94_v35 = vld [vmem:[#allocation5 + $0x68] sm:$0xff]  ;;  %v586_v36 = vpack.c.bf16 %v184_v32, %v183_v31  ;;  %v185_v37 = vld [vmem:[#allocation7 + $0x50] sm:$0xff] }
  0x52   :  { %555 = vmatprep.subr.bf16.mxu0 %v759_v0  ;;  %v186_v38 = vld [vmem:[#allocation7 + $0x58] sm:$0xff]  ;;  %v568_v39 = vpack.c.bf16 %v94_v35, %v93_v34  ;;  %v95_v40 = vld [vmem:[#allocation5 + $0x70] sm:$0xff]  ;;  %v187_v43 = vld [vmem:[#allocation7 + $0x60] sm:$0xff] }
  0x53   :  { %578 = vmatpush3.bf16.msra.mxu1 %v577_v18  ;;  %v96_v41 = vld [vmem:[#allocation5 + $0x78] sm:$0xff]  ;;  %v589_v42 = vpack.c.bf16 %v186_v38, %v185_v37  ;;  %v188_v44 = vld [vmem:[#allocation7 + $0x68] sm:$0xff]  ;;  %v189_v48 = vld [vmem:[#allocation7 + $0x70] sm:$0xff] }
  0x54   :  { %579 = vmatprep.subr.bf16.mxu1 %v759_v0  ;;  %v571_v45 = vpack.c.bf16 %v96_v41, %v95_v40  ;;  %v592_v46 = vpack.c.bf16 %v188_v44, %v187_v43  ;;  %v80_v47 = vld [vmem:[#allocation2] sm:$0xff]  ;;  %v269_v51 = vld [vmem:[#allocation8] sm:$0xff]  ;;  %v270_v52 = vld [vmem:[#allocation8 + $0x8] sm:$0xff] }
  0x55   :  { %557 = vmatpush3.bf16.msra.mxu0 %v556_v14  ;;  %v190_v49 = vld [vmem:[#allocation7 + $0x78] sm:$0xff]  ;;  %v271_v53 = vld [vmem:[#allocation8 + $0x10] sm:$0xff]  ;;  %v598_v54 = vpack.c.bf16 %v270_v52, %v269_v51  ;;  %v273_v57 = vld [vmem:[#allocation8 + $0x20] sm:$0xff] }
  0x56   :  { %558 = vmatprep.subr.bf16.mxu0 %v759_v0  ;;  %v595_v50 = vpack.c.bf16 %v190_v49, %v189_v48  ;;  %v272_v55 = vld [vmem:[#allocation8 + $0x18] sm:$0xff]  ;;  %v274_v58 = vld [vmem:[#allocation8 + $0x28] sm:$0xff]  ;;  %v275_v60 = vld [vmem:[#allocation8 + $0x30] sm:$0xff] }
  0x57   :  { %581 = vmatpush3.bf16.msra.mxu1 %v580_v24  ;;  %v601_v56 = vpack.c.bf16 %v272_v55, %v271_v53  ;;  %v604_v59 = vpack.c.bf16 %v274_v58, %v273_v57  ;;  %v276_v61 = vld [vmem:[#allocation8 + $0x38] sm:$0xff]  ;;  %v277_v63 = vld [vmem:[#allocation8 + $0x40] sm:$0xff]  ;;  %v279_v3 = vld [vmem:[#allocation8 + $0x50] sm:$0xff] }
  0x58   :  { %582 = vmatprep.subr.bf16.mxu1 %v759_v0  ;;  %v607_v62 = vpack.c.bf16 %v276_v61, %v275_v60  ;;  %v280_v4 = vld [vmem:[#allocation8 + $0x58] sm:$0xff]  ;;  %v281_v6 = vld [vmem:[#allocation8 + $0x60] sm:$0xff]  ;;  %v282_v7 = vld [vmem:[#allocation8 + $0x68] sm:$0xff] }
  0x59   :  { %560 = vmatpush3.bf16.msra.mxu0 %v559_v21  ;;  %v613_v5 = vpack.c.bf16 %v280_v4, %v279_v3  ;;  %v616_v8 = vpack.c.bf16 %v282_v7, %v281_v6  ;;  %v390_v9 = vld [vmem:[%s913_s2] ss:$0 sm:$0xff]  ;;  %v283_v14 = vld [vmem:[#allocation8 + $0x70] sm:$0xff] }
  0x5a   :  { %561 = vmatprep.subr.bf16.mxu0 %v759_v0  ;;  %v284_v15 = vld [vmem:[#allocation8 + $0x78] sm:$0xff] }
  0x5b   :  { %584 = vmatpush3.bf16.msra.mxu1 %v583_v30  ;;  %v619_v16 = vpack.c.bf16 %v284_v15, %v283_v14  ;;  %v391_v17 = vld [vmem:[%s915_s4] ss:$0 sm:$0xff]  ;;  %s762_s4 = smov [#allocation10]  }
  0x5c   :  { %585 = vmatprep.subr.bf16.mxu1 %v759_v0  ;;  %v392_v21 = vld [vmem:[%s917_s6] ss:$0 sm:$0xff]  ;;  %s379_s28 = sshll.u32 %s762_s4, 4  ;;  %s380_s28 = int_to_ptr.vmem [resolvable:$true] %s379_s28 }
  0x5d   :  { %563 = vmatpush3.bf16.msra.mxu0 %v562_v27  ;;  %s723_s6 = scalar_lea.vmem %s380_s28, 128  ;;  %p728_p5 = scmp.lt.s32.totalorder %s380_s28, %s380_s28 }
  0x5e   :  { %564 = vmatprep.subr.bf16.mxu0 %v759_v0  ;;  %p724_p4 = scmp.ne.s32.totalorder %s380_s28, %s723_s6  ;;  %p729_p6 = scmp.lt.s32.totalorder %s723_s6, %s723_s6 }
  0x5f   :  { %587 = vmatpush3.bf16.msra.mxu1 %v586_v36 }
  0x60   :  { %588 = vmatprep.subr.bf16.mxu1 %v759_v0  ;;  %p730_p7 = por %p729_p6, %p728_p5 }
  0x61   :  { %566 = vmatpush3.bf16.msra.mxu0 %v565_v33 }
  0x62   :  { %567 = vmatprep.subr.bf16.mxu0 %v759_v0  ;;  %p731_p8 = pnand %p730_p7, %p724_p4 }
  0x63   :  { %590 = vmatpush3.bf16.msra.mxu1 %v589_v42 }
  0x64   :  { %591 = vmatprep.subr.bf16.mxu1 %v759_v0 }
  0x65   :  { %569 = vmatpush3.bf16.msra.mxu0 %v568_v39 }
  0x66   :  { %570 = vmatprep.subr.bf16.mxu0 %v759_v0 }
  0x67   :  { %593 = vmatpush3.bf16.msra.mxu1 %v592_v46 }
  0x68   :  { %594 = vmatprep.subr.bf16.mxu1 %v759_v0 }
  0x69   :  { %572 = vmatpush3.bf16.msra.mxu0 %v571_v45 }
  0x6a   :  { %597 = vmatprep.subr.bf16.mxu0 %v759_v0 }
  0x6b   :  { %596 = vmatpush3.bf16.msra.mxu1 %v595_v50 }
  0x6c   :  { %477 = vmatmul.mubr.f32.vlgmr.msra.gmra.mrb[0].mxu0 %v80_v47 }
  0x6d   :  { %546 = vmatprep.mubr.msk.f32.mxu0 %vm760_vm0, %v761_v1  ;;  %599 = vmatpush3.bf16.msra.mxu0 %v598_v54  ;;  %v278_v1 = vld [vmem:[#allocation8 + $0x48] sm:$0xff] }
  0x6e   :  { %600 = vmatprep.subr.bf16.mxu0 %v759_v0  ;;  %v610_v2 = vpack.c.bf16 %v278_v1, %v277_v63 }
  0x71   :  { %602 = vmatpush3.bf16.msra.mxu0 %v601_v56 }
  0x72   :  { %603 = vmatprep.subr.bf16.mxu0 %v759_v0 }
  0x75   :  { %605 = vmatpush3.bf16.msra.mxu0 %v604_v59 }
  0x76   :  { %606 = vmatprep.subr.bf16.mxu0 %v759_v0 }
  0x79   :  { %608 = vmatpush3.bf16.msra.mxu0 %v607_v62 }
  0x7a   :  { %609 = vmatprep.subr.bf16.mxu0 %v759_v0 }
  0x7d   :  { %611 = vmatpush3.bf16.msra.mxu0 %v610_v2 }
  0x7e   :  { %612 = vmatprep.subr.bf16.mxu0 %v759_v0 }
  0x81   :  { %614 = vmatpush3.bf16.msra.mxu0 %v613_v5 }
  0x82   :  { %615 = vmatprep.subr.bf16.mxu0 %v759_v0 }
  0x85   :  { %617 = vmatpush3.bf16.msra.mxu0 %v616_v8 }
  0x86   :  { %618 = vmatprep.subr.bf16.mxu0 %v759_v0 }
  0x89   :  { %620 = vmatpush3.bf16.msra.mxu0 %v619_v16 }
 0x13f   :  { %v170_v10 = vpop.f32.mrb[0].mxu0 }
 0x140   :  { %v171_v11 = vadd.f32 %v390_v9, %v170_v10  ;;  %v478_v12 = vpop.f32.mrb[1].mxu0 }
 0x142   :  { %v174_v13 = vmax.f32 %v171_v11, 0.0 }
 0x144   :  { %512 = vmatmul.mubr.f32.vlgmr.msra.gmra.mrb[0].mxu1 %v174_v13 }
 0x217   :  { %v264_v18 = vpop.f32.mrb[0].mxu1 }
 0x218   :  { %v265_v19 = vadd.f32 %v391_v17, %v264_v18  ;;  %v513_v0 = vpop.f32.mrb[1].mxu1 }
 0x21a   :  { %v268_v20 = vmax.f32 %v265_v19, 0.0 }
 0x21c   :  { %547 = vmatmul.mubr.f32.vlgmr.msra.gmra.mrb[2].mxu0 %v268_v20 }
 0x2ef   :  { %v358_v22 = vpop.f32.mrb[2].mxu0 }
 0x2f0   :  { %v359_v23 = vadd.f32 %v392_v21, %v358_v22  ;;  %v548_v24 = vpop.f32.mrb[3].mxu0 }
 0x2f2   :  { %362 = vmax.xlane.f32.xlu0 %v359_v23 }
 0x37f   :  { %v363_v25 = vpop.xlane.xlu0 %362 }
 0x380   :  { %v364_v26 = vsub.f32 %v359_v23, %v363_v25 }
 0x382   :  { %v365_v27 = vmul.f32 1.442695, %v364_v26 }
 0x384   :  { %631 = vpow2.f32 %v365_v27 }
 0x38e   :  { %v632_v28 = vpop.eup %631 }
 0x38f   :  { %367 = vadd.xlane.f32.xlu0 %v632_v28 }
 0x41c   :  { %v368_v29 = vpop.xlane.xlu0 %367 }
 0x41d   :  { %633 = vlog2.f32 %v368_v29 }
 0x427   :  { %v634_v30 = vpop.eup %633 }
 0x428   :  { %v370_v31 = vmul.f32 0.6931472, %v634_v30 }
 0x42a   :  { %v371_v32 = vsub.f32 %v364_v26, %v370_v31 }
 0x42c   :  { %372 = vst [vmem:[#allocation10] sm:$0xff] %v371_v32 }
 0x42d   :  { %734 = shalt.err (!%p731_p8)
}
 0x42e   :  { %s735_s8 = scalar_lea.hbm %s918_s7, 128 }
 0x42f   :  { %p736_p9 = scmp.ne.s32.totalorder %s918_s7, %s735_s8  ;;  %p739_p10 = scmp.lt.u32.totalorder %s735_s8, %s918_s7 }
 0x431   :  { %p741_p11 = pnand %p739_p10, %p736_p9 }
 0x433   :  { %744 = shalt.err (!%p741_p11)
}
 0x434   :  { %382 = dma.vmem_to_hbm [thread:$0]  %s380_s28, 128, %s918_s7, [#allocation4]  }
 0x435   :  { %751 = dma.done.wait [#allocation4], 128  }
 0x436   :  { %752 = vsyncadd [#allocation4], 4294967168 }
 0x437   :  { %386 = vsyncpa [#allocation3], 1 }
 0x438   :  { %387 = vsyncpa [#allocation6], 1 }
 0x439   :  { %388 = vsyncpa [#allocation9], 1 }
 0x43a   :  { %389 = vsyncpa [#allocation4], 1 }

</bundles_post_ra>
